<compile_context>
chip_gen: v7x
topology: tpu7x:2x2x1
jax: 0.10.0
libtpu: 0.0.40
codegen_flags: <defaults>
</compile_context>

<pallas_src>
import functools

import jax
import jax.numpy as jnp
from jax.experimental import pallas as pl
from jax.experimental.pallas import tpu as pltpu


def _prenorm_conv_kernel(x_ref, w_ref, b_ref, o_ref, *, eps):
    # x_ref: (C, TS) spatial tile, native dtype.  The ragged last tile may
    #        contain unspecified columns; stats and the 1x1-conv matmul are
    #        strictly per-column, and Pallas clips the output writeback, so
    #        garbage never reaches valid output columns.
    # w_ref: (C, C)  bf16 1x1-conv weight with the LayerNorm gain folded in.
    # b_ref: (C, 1)  f32 bias.
    # o_ref: (C, TS) output tile, native dtype.
    x = x_ref[...].astype(jnp.float32)                 # stats always in f32
    c = x.shape[0]
    inv_c = jnp.float32(1.0 / c)

    # One-pass channel statistics (sublane reduction), unbiased=False variance.
    s1 = jnp.sum(x, axis=0, keepdims=True)             # (1, TS)
    s2 = jnp.sum(x * x, axis=0, keepdims=True)         # (1, TS)
    mean = s1 * inv_c
    # E[x^2] - mean^2 can cancel to a small negative in f32 -> clamp (free, VPU slack).
    var = jnp.maximum(s2 * inv_c - mean * mean, jnp.float32(0.0))
    inv_std = jax.lax.rsqrt(var + jnp.float32(eps))    # EUP

    # Normalize in f32; cast only the MXU operand to bf16.
    norm = ((x - mean) * inv_std).astype(jnp.bfloat16)

    # fn: 1x1 conv == channel-mixing matmul on the MXU (gain already in W).
    y = jnp.dot(w_ref[...], norm, preferred_element_type=jnp.float32) + b_ref[...]
    o_ref[...] = y.astype(o_ref.dtype)


def _round_up(x, m):
    return ((x + m - 1) // m) * m


def _pick_spatial_tile(C, S, in_itemsize, out_itemsize, w_bytes):
    """Largest lane-dense spatial tile (multiple of 128, capped at 1024) whose
    double-buffered working set stays inside a conservative VMEM budget."""
    BUDGET = 48 * 1024 * 1024            # leaves headroom on v7x (64 MiB physical)
    ts = min(1024, _round_up(S, 128))    # never wider than the (padded) image
    while True:
        need = 2 * C * ts * (in_itemsize + out_itemsize) + 2 * w_bytes + 2 * C * 4
        if need <= BUDGET or ts <= 128:
            break
        ts = max(128, _round_up(ts // 2, 128))
    # Scoped-VMEM limit: working set + headroom, kept under v7x's 64 MiB physical.
    vmem_limit = min(need + (16 << 20), 56 << 20)
    if vmem_limit < need + (2 << 20):    # pathological C: ask for exactly what we need
        vmem_limit = need + (2 << 20)
    return ts, int(vmem_limit)


def prenorm_conv(x_nchw, g, w, b):
    """PreNorm(dim, fn=Conv2d(dim, dim, 1)) forward.

    x_nchw: (B, C, H, W) activations (f32 or bf16; kept in native dtype)
    g:      (C,) or (1, C, 1, 1) LayerNorm gain
    w:      (C, C) or (C, C, 1, 1) 1x1-conv weight
    b:      (C,) conv bias
    """
    B, C, H, W = x_nchw.shape
    S = H * W
    x = x_nchw.reshape(B, C, S)                         # metadata-only reshape

    # Mirror torch LayerNorm's eps branch on the input dtype.
    eps = 1e-5 if x.dtype == jnp.float32 else 1e-3

    # Fold the per-input-channel LayerNorm gain into the conv weight (one-time O(C^2)).
    w_folded = (w.reshape(C, C).astype(jnp.float32)
                * g.reshape(C).astype(jnp.float32)[None, :]).astype(jnp.bfloat16)
    b2 = b.reshape(C, 1).astype(jnp.float32)

    out_dtype = x.dtype
    TS, vmem_limit = _pick_spatial_tile(
        C, S, jnp.dtype(x.dtype).itemsize, jnp.dtype(out_dtype).itemsize, C * C * 2)
    n_s = pl.cdiv(S, TS)

    kernel = functools.partial(_prenorm_conv_kernel, eps=eps)
    out = pl.pallas_call(
        kernel,
        out_shape=jax.ShapeDtypeStruct((B, C, S), out_dtype),
        grid_spec=pltpu.PrefetchScalarGridSpec(
            num_scalar_prefetch=0,
            grid=(B, n_s),
            in_specs=[
                pl.BlockSpec((None, C, TS), lambda bi, si: (bi, 0, si)),
                pl.BlockSpec((C, C), lambda bi, si: (0, 0)),   # constant index -> resident
                pl.BlockSpec((C, 1), lambda bi, si: (0, 0)),   # constant index -> resident
            ],
            out_specs=pl.BlockSpec((None, C, TS), lambda bi, si: (bi, 0, si)),
        ),
        compiler_params=pltpu.CompilerParams(
            dimension_semantics=("parallel", "parallel"),
            vmem_limit_bytes=vmem_limit),
    )(x, w_folded, b2)

    return out.reshape(B, C, H, W)


def _reference(x_nchw, g, w, b):
    # Pure-JAX reference mirroring the PyTorch module (f32 math).
    eps = 1e-5 if x_nchw.dtype == jnp.float32 else 1e-3
    xf = x_nchw.astype(jnp.float32)
    mean = jnp.mean(xf, axis=1, keepdims=True)
    var = jnp.var(xf, axis=1, keepdims=True)            # ddof=0 == unbiased=False
    norm = (xf - mean) * jax.lax.rsqrt(var + eps) * g.reshape(1, -1, 1, 1).astype(jnp.float32)
    C = xf.shape[1]
    y = jnp.einsum("oc,bchw->bohw", w.reshape(C, C).astype(jnp.float32), norm)
    return y + b.reshape(1, -1, 1, 1).astype(jnp.float32)


if __name__ == "__main__":
    key = jax.random.PRNGKey(0)
    k_x, k_w, k_b, k_x2 = jax.random.split(key, 4)

    # Case 1: module-scale shapes, tile-aligned spatial extent.
    B, C, H, W = 2, 4, 16, 16
    x = jax.random.normal(k_x, (B, C, H, W), dtype=jnp.float32)
    g = jnp.ones((C,), dtype=jnp.float32)                 # LayerNorm gain init (ones)
    w = jax.random.normal(k_w, (C, C), dtype=jnp.float32) * 0.1
    b = jax.random.normal(k_b, (C,), dtype=jnp.float32) * 0.1

    out = prenorm_conv(x, g, w, b)
    jax.block_until_ready(out)
    ref = _reference(x, g, w, b)
    assert out.shape == (B, C, H, W)
    # bf16 MXU operands -> relaxed tolerance vs the f32 reference.
    assert jnp.allclose(out, ref, atol=2e-2, rtol=2e-2), "case 1 mismatch vs reference"

    # Case 2: ragged spatial extent (S = 324, not a multiple of 128) with offset
    # activations -- exercises the in-kernel padded edge tile (no host pad/slice)
    # and the variance clamp path.
    B2, C2, H2, W2 = 1, 8, 18, 18
    x2 = jax.random.normal(k_x2, (B2, C2, H2, W2), dtype=jnp.float32) * 3.0 + 5.0
    g2 = jnp.ones((C2,), dtype=jnp.float32)
    w2 = jax.random.normal(k_w, (C2, C2), dtype=jnp.float32) * 0.1
    b2 = jax.random.normal(k_b, (C2,), dtype=jnp.float32) * 0.1

    out2 = prenorm_conv(x2, g2, w2, b2)
    jax.block_until_ready(out2)
    ref2 = _reference(x2, g2, w2, b2)
    assert out2.shape == (B2, C2, H2, W2)
    assert jnp.allclose(out2, ref2, atol=2e-2, rtol=2e-2), "case 2 mismatch vs reference"

    print("KERNEL_OK")
</pallas_src>

<mosaic_0001>
module attributes {stable_mosaic.version = 11 : i64} {
  func.func @_prenorm_conv_kernel(%arg0: i32, %arg1: i32, %arg2: memref<1x4x256xf32, #tpu.memory_space<vmem>>, %arg3: memref<4x4xbf16, #tpu.memory_space<vmem>>, %arg4: memref<4x1xf32, #tpu.memory_space<vmem>>, %arg5: memref<1x4x256xf32, #tpu.memory_space<vmem>>) attributes {dimension_semantics = [#tpu.dimension_semantics<parallel>, #tpu.dimension_semantics<parallel>], iteration_bounds = array<i64: 2, 1>, scalar_prefetch = 0 : i64, scratch_operands = 0 : i64, tpu.core_type = #tpu.core_type<tc>, window_params = [{transform_indices = @transform_0, window_bounds = array<i64: 1, 4, 256>}, {pipeline_mode = #tpu.pipeline_mode<synchronous>, transform_indices = @transform_1, window_bounds = array<i64: 4, 4>}, {pipeline_mode = #tpu.pipeline_mode<synchronous>, transform_indices = @transform_2, window_bounds = array<i64: 4, 1>}, {transform_indices = @transform_3, window_bounds = array<i64: 1, 4, 256>}]} {
    %c0 = arith.constant 0 : index
    %c0_0 = arith.constant 0 : index
    %c0_1 = arith.constant 0 : index
    %0 = vector.load %arg2[%c0, %c0_0, %c0_1] : memref<1x4x256xf32, #tpu.memory_space<vmem>>, vector<1x4x256xf32>
    %1 = vector.shape_cast %0 : vector<1x4x256xf32> to vector<4x256xf32>
    %cst = arith.constant dense<0.000000e+00> : vector<256xf32>
    %2 = vector.multi_reduction <add>, %1, %cst [0] : vector<4x256xf32> to vector<256xf32>
    %3 = vector.shape_cast %2 : vector<256xf32> to vector<1x256xf32>
    %4 = arith.mulf %1, %1 : vector<4x256xf32>
    %cst_2 = arith.constant dense<0.000000e+00> : vector<256xf32>
    %5 = vector.multi_reduction <add>, %4, %cst_2 [0] : vector<4x256xf32> to vector<256xf32>
    %6 = vector.shape_cast %5 : vector<256xf32> to vector<1x256xf32>
    %cst_3 = arith.constant 2.500000e-01 : f32
    %7 = vector.broadcast %cst_3 : f32 to vector<1x256xf32>
    %8 = arith.mulf %3, %7 : vector<1x256xf32>
    %cst_4 = arith.constant 2.500000e-01 : f32
    %9 = vector.broadcast %cst_4 : f32 to vector<1x256xf32>
    %10 = arith.mulf %6, %9 : vector<1x256xf32>
    %11 = arith.mulf %8, %8 : vector<1x256xf32>
    %12 = arith.subf %10, %11 : vector<1x256xf32>
    %cst_5 = arith.constant 0.000000e+00 : f32
    %13 = vector.broadcast %cst_5 : f32 to vector<1x256xf32>
    %14 = arith.maximumf %12, %13 : vector<1x256xf32>
    %cst_6 = arith.constant 9.99999974E-6 : f32
    %15 = vector.broadcast %cst_6 : f32 to vector<1x256xf32>
    %16 = arith.addf %14, %15 : vector<1x256xf32>
    %17 = math.rsqrt %16 : vector<1x256xf32>
    %18 = vector.broadcast %8 : vector<1x256xf32> to vector<4x256xf32>
    %19 = arith.subf %1, %18 : vector<4x256xf32>
    %20 = vector.broadcast %17 : vector<1x256xf32> to vector<4x256xf32>
    %21 = arith.mulf %19, %20 : vector<4x256xf32>
    %22 = arith.truncf %21 : vector<4x256xf32> to vector<4x256xbf16>
    %c0_7 = arith.constant 0 : index
    %c0_8 = arith.constant 0 : index
    %23 = vector.load %arg3[%c0_7, %c0_8] : memref<4x4xbf16, #tpu.memory_space<vmem>>, vector<4x4xbf16>
    %cst_9 = arith.constant dense<0.000000e+00> : vector<4x256xf32>
    %24 = tpu.matmul %23, %22, %cst_9 {dimension_numbers = #tpu.dot_dimension_numbers<[1], [0], [0], [1], [0, 0, 1, 1], [], []>} : vector<4x4xbf16>, vector<4x256xbf16>, vector<4x256xf32> -> vector<4x256xf32>
    %c0_10 = arith.constant 0 : index
    %c0_11 = arith.constant 0 : index
    %25 = vector.load %arg4[%c0_10, %c0_11] : memref<4x1xf32, #tpu.memory_space<vmem>>, vector<4x1xf32>
    %26 = vector.broadcast %25 : vector<4x1xf32> to vector<4x256xf32>
    %27 = arith.addf %24, %26 : vector<4x256xf32>
    %c0_12 = arith.constant 0 : index
    %c0_13 = arith.constant 0 : index
    %c0_14 = arith.constant 0 : index
    %28 = vector.load %arg5[%c0_12, %c0_13, %c0_14] : memref<1x4x256xf32, #tpu.memory_space<vmem>>, vector<1x4x256xf32>
    %29 = vector.shape_cast %28 : vector<1x4x256xf32> to vector<4x256xf32>
    %30 = vector.shape_cast %27 : vector<4x256xf32> to vector<1x4x256xf32>
    tpu.vector_store %arg5[%c0_12, %c0_13, %c0_14], %30 {strides = array<i32>} : memref<1x4x256xf32, #tpu.memory_space<vmem>>, vector<1x4x256xf32>,
    return
  }
  func.func @transform_0(%arg0: i32, %arg1: i32) -> (i32, i32, i32) {
    %c0_i32 = arith.constant 0 : i32
    %c0_i32_0 = arith.constant 0 : i32
    return %arg0, %c0_i32, %arg1 : i32, i32, i32
  }
  func.func @transform_1(%arg0: i32, %arg1: i32) -> (i32, i32) {
    %c0_i32 = arith.constant 0 : i32
    %c0_i32_0 = arith.constant 0 : i32
    %c0_i32_1 = arith.constant 0 : i32
    return %c0_i32, %c0_i32_0 : i32, i32
  }
  func.func @transform_2(%arg0: i32, %arg1: i32) -> (i32, i32) {
    %c0_i32 = arith.constant 0 : i32
    %c0_i32_0 = arith.constant 0 : i32
    %c0_i32_1 = arith.constant 0 : i32
    return %c0_i32, %c0_i32_0 : i32, i32
  }
  func.func @transform_3(%arg0: i32, %arg1: i32) -> (i32, i32, i32) {
    %c0_i32 = arith.constant 0 : i32
    %c0_i32_0 = arith.constant 0 : i32
    return %arg0, %c0_i32, %arg1 : i32, i32, i32
  }
}

</mosaic_0001>

<bundles_post_ra>
// kernel: tpu_custom_call.1
= control target key start
LH: loop header
LB: loop body
LE: loop exit
PB: predicated region body
PF: predicated region fallthrough
CT: control target
= control target key end

     0   :  { %8 = vsyncpa [#allocation3], 0  ;;  %s846_s0 = inlined_call_operand.hbm [shape: f32[2,4,256], index: 0, kind: input, shape index: {}]   ;;  %s847_s1 = inlined_call_operand.vmem [shape: bf16[4,4], index: 1, kind: input, shape index: {}]   ;;  %s848_s2 = inlined_call_operand.vmem [shape: f32[4,1], index: 2, kind: input, shape index: {}]   ;;  %s849_s3 = inlined_call_operand.hbm [shape: f32[2,4,256], index: 3, kind: output, shape index: {}]  }
   0x1   :  { %10 = vsyncpa [#allocation3 + $0x1], 0 }
   0x2   :  { %11 = vsyncpa [#allocation4], 0 }
   0x3   :  { %13 = vsyncpa [#allocation4 + $0x1], 0  ;;  %s664_s12 = smov 0   ;;  %s666_s13 = smov 0  }
   0x4   :  { %s668_s14 = smov 0   ;;  %s670_s15 = smov 0  }
   0x5   :  { %s672_s16 = smov 0   ;;  %s674_s17 = smov 0  }
   0x6 LB: > { %s439_s18 = sadd.s32 4294967295, %s639_s17   ;;  %s440_s19 = sadd.s32 4294967294, %s639_s17   ;;  %s639_s17 = sphi %s674_s17, %s19_s17   ;;  %s635_s16 = sphi %s672_s16, %s865_s16   ;;  %s631_s15 = sphi %s670_s15, %s864_s15   ;;  %s627_s14 = sphi %s668_s14, %s863_s14   ;;  %s623_s13 = sphi %s666_s13, %s862_s13   ;;  %s619_s12 = sphi %s664_s12, %s861_s12  }
   0x7   : > { %s31_s20 = sadd.s32 1, %s635_s16  ;;  %s40_s21 = sadd.s32 1, %s627_s14 }
   0x8   : > { %p33_p0 = scmp.ge.s32.totalorder %s31_s20, 2  ;;  %p47_p1 = scmp.ne.s32.totalorder %s627_s14, %s623_s13 }
   0x9   : > { %p48_p2 = scmp.eq.s32.totalorder %s639_s17, 0  ;;  %p53_p3 = scmp.ne.s32.totalorder %s623_s13, %s619_s12 }
   0xa   : > { %s867_s20 = smov (%p33_p0, %s31_s20), 0  ;;  %p54_p5 = scmp.eq.s32.totalorder %s439_s18, 0 }
   0xb   : > { %p705_p4 = por %p48_p2, %p47_p1  ;;  %s35_s23 = ssub.s32 %s635_s16, %s867_s20 }
   0xc   : > { %p121_p6 = scmp.eq.s32.totalorder %s439_s18, 1  ;;  %p38_p7 = scmp.eq.s32.totalorder %s35_s23, 0 }
   0xd   : > { %p711_p8 = por %p54_p5, %p53_p3  ;;  %p127_p10 = scmp.eq.s32.totalorder %s440_s19, 1 }
   0xe   : > { %p715_p9 = por %p121_p6, %p47_p1  ;;  %p470_p13 = scmp.lt.s32.totalorder %s639_s17, 2 }
   0xf   : > { %s720_s26 = scalar_select %p38_p7, %s627_s14, %s40_s21  }
  0x10   : > { %s853_s25 = scalar_select %p715_p9, 1, 0 }
  0x11   : > { %p722_p11 = por %p127_p10, %p53_p3  ;;  %s153_s28 = sand.u32 1, %s627_s14  }
  0x12   : > { %s443_s29 = sshll.u32 %s153_s28, 3  ;;  %s456_s30 = sshll.u32 %s635_s16, 7 }
  0x13   : > { %s854_s27 = scalar_select %p722_p11, 1, 0 }
  0x14   : > { %s733_s6 = scalar_lea.hbm %s846_s0, %s456_s30  ;;  %s157_s7 = scalar_lea.vmem [#allocation2], %s443_s29 }
  0x15   : > { %s167_s8 = sshll.u32 %s157_s7, 4  ;;  %p739_p0 = pnand %p470_p13, %p705_p4  ;;  %s735_s8 = int_to_ptr.vmem [resolvable:$true] %s167_s8 }
  0x16   : > { %s154_s10 = scalar_lea.sflag [#allocation3], %s153_s28  ;;  %s527_s11 = scalar_lea.hbm %s733_s6, 128 }
  0x17   : > { %p528_p3 = scmp.ne.s32.totalorder %s733_s6, %s527_s11  ;;  %p529_p5 = pneg %p739_p0 }
  0x18   : > { %s532_s21 = scalar_lea.hbm %s846_s0, 256  ;;  %p533_p4 = scmp.lt.u32.totalorder %s733_s6, %s846_s0 }
  0x19   : > { %p530_p6 = pnand %p529_p5, %p528_p3  ;;  %p534_p10 = scmp.lt.u32.totalorder %s532_s21, %s527_s11 }
  0x1a   : > { %p536_p12 = scmp.lt.u32.totalorder %s527_s11, %s733_s6 }
  0x1b   : > { %p531_p7 = pneg %p530_p6  ;;  %p535_p13 = por %p534_p10, %p533_p4 }
  0x1d   : > { %p537_p1 = por %p536_p12, %p535_p13 }
  0x1f   : > { %p538_p2 = pnand %p537_p1, %p531_p7 }
  0x21   : > { %541 = shalt.err (!%p538_p2)
}
  0x22   : > { %s542_s28 = scalar_lea.vmem %s735_s8, 128  ;;  %s641_s29 = smov [#allocation2]  }
  0x23   : > { %p543_p3 = scmp.ne.s32.totalorder %s735_s8, %s542_s28  ;;  %s547_s30 = sshll.u32 %s641_s29, 4  ;;  %s548_s30 = int_to_ptr.vmem [resolvable:$false] %s547_s30 }
  0x24   : > { %s549_s4 = scalar_lea.vmem %s548_s30, 256  ;;  %p550_p9 = scmp.lt.s32.totalorder %s735_s8, %s548_s30 }
  0x25   : > { %p545_p6 = pnand %p543_p3, %p529_p5  ;;  %p551_p4 = scmp.lt.s32.totalorder %s549_s4, %s542_s28 }
  0x27   : > { %p546_p11 = pneg %p545_p6  ;;  %p552_p10 = por %p551_p4, %p550_p9 }
  0x29   : > { %p553_p12 = pnand %p552_p10, %p546_p11 }
  0x2b   : > { %556 = shalt.err (!%p553_p12)
}
  0x2c   : > { %465 = dma.hbm_to_vmem [thread:$0]  (!%p739_p0), %s733_s6, 128, %s735_s8, %s154_s10  }
  0x2d   : > { %p856_p1 = scmp.lt.s32.totalorder %s639_s17, 3  ;;  %p857_p2 = scmp.ge.s32.totalorder %s639_s17, 1 }
  0x2f   : > { %p173_p5 = pnand %p857_p2, %p856_p1 }
  0x30   : > { %s775_s5 = sand.u32 (!%p173_p5), 1, %s623_s13  }
  0x31   : > { %176 = sbr.rel (%p173_p5) target bundleno = 337 (0x151), region = 32  ;;  %s447_s7 = sshll.u32 (!%p173_p5), %s775_s5, 3 }
  0x32   : > { %s179_s11 = scalar_lea.sflag (!%p173_p5), [#allocation3], %s775_s5  ;;  %s182_s9 = scalar_lea.vmem (!%p173_p5), [#allocation2], %s447_s7 }
  0x38   : > { %610 = dma.done.wait (%p711_p8), %s179_s11, 128  }
  0x39   : > { %612 = vsyncadd (%p711_p8), %s179_s11, 4294967168  ;;  %v642_v0 = vmov 0   ;;  %vm212_vm0 = vcmask 1043456   ;;  %v208_v1 = vld [vmem:[%s182_s9] sm:$0xff]  ;;  %vm285_vm1 = vcmask 1041408   ;;  %vm281_vm2 = vcmask 31744  }
  0x3a   : > { %324 = vmatprep.mubr.bf16.mxu0 %v642_v0  ;;  %521 = vset.pattern.permute.xlu0 %v642_v0  ;;  %v275_v2 = vld [vmem:[%s848_s2] sm:$0xf]  ;;  %v210_v3 = vcombine.high %v208_v1, %v208_v1  ;;  %v213_v4 = vsel %vm212_vm0, %v208_v1, 0.0  ;;  %v227_v5 = vmul.f32 %v208_v1, %v208_v1  ;;  %s457_s18 = sshll.u32 %s631_s15, 7  ;;  %s204_s19 = scalar_lea.vmem [#allocation5], %s447_s7 }
  0x3b   : > { %278 = vperm.xlu0 %521, %v275_v2   ;;  %v214_v6 = vrot.slane %v213_v4, 4  ;;  %v274_v56 = vld [vmem:[%s847_s1] sm:$0x3]  ;;  %s355_s21 = sshll.u32 %s204_s19, 4  ;;  %s797_s28 = scalar_lea.hbm %s849_s3, %s457_s18  ;;  %s799_s21 = int_to_ptr.vmem [resolvable:$true] %s355_s21 }
  0x3c   : > { %v220_v7 = vsel %vm212_vm0, %v210_v3, 0.0  ;;  %v229_v8 = vcombine.high %v227_v5, %v227_v5  ;;  %v231_v9 = vsel %vm212_vm0, %v227_v5, 0.0  ;;  %s339_s29 = scalar_lea.sflag [#allocation4], %s775_s5  ;;  %s557_s15 = scalar_lea.vmem %s799_s21, 128 }
  0x3d   : > { %v215_v10 = vadd.f32 %v214_v6, %v213_v4  ;;  %v221_v11 = vrot.slane %v220_v7, 4  ;;  %v232_v12 = vrot.slane %v231_v9, 4  ;;  %p558_p8 = scmp.ne.s32.totalorder %s799_s21, %s557_s15  ;;  %p858_p9 = scmp.ne.s32.totalorder %s853_s25, 0 }
  0x3e   : > { %v238_v13 = vsel %vm212_vm0, %v229_v8, 0.0  ;;  %s643_s30 = smov [#allocation5]  }
  0x3f   : > { %v216_v14 = vrot.slane %v215_v10, 2  ;;  %v222_v15 = vadd.f32 %v221_v11, %v220_v7  ;;  %v233_v16 = vadd.f32 %v232_v12, %v231_v9  ;;  %v239_v17 = vrot.slane %v238_v13, 4  ;;  %p559_p11 = pnand %p558_p8, %p858_p9  ;;  %s561_s4 = sshll.u32 %s643_s30, 4  ;;  %s562_s4 = int_to_ptr.vmem [resolvable:$false] %s561_s4 }
  0x40   : > { %s563_s7 = scalar_lea.vmem %s562_s4, 256  ;;  %p564_p7 = scmp.lt.s32.totalorder %s799_s21, %s562_s4 }
  0x41   : > { %v217_v18 = vadd.f32 %v216_v14, %v215_v10  ;;  %v223_v19 = vrot.slane %v222_v15, 2  ;;  %v234_v20 = vrot.slane %v233_v16, 2  ;;  %v240_v21 = vadd.f32 %v239_v17, %v238_v13  ;;  %p560_p0 = pneg %p559_p11  ;;  %p565_p13 = scmp.lt.s32.totalorder %s563_s7, %s557_s15 }
  0x43   : > { %v218_v22 = vrot.slane %v217_v18, 1  ;;  %v224_v23 = vadd.f32 %v223_v19, %v222_v15  ;;  %v235_v24 = vadd.f32 %v234_v20, %v233_v16  ;;  %v241_v25 = vrot.slane %v240_v21, 2  ;;  %p566_p3 = por %p565_p13, %p564_p7 }
  0x45   : > { %v219_v26 = vadd.f32 %v218_v22, %v217_v18  ;;  %v225_v27 = vrot.slane %v224_v23, 1  ;;  %v236_v28 = vrot.slane %v235_v24, 1  ;;  %v242_v29 = vadd.f32 %v241_v25, %v240_v21  ;;  %p567_p6 = pnand %p566_p3, %p560_p0 }
  0x47   : > { %v226_v30 = vadd.f32 %v225_v27, %v224_v23  ;;  %v237_v31 = vadd.f32 %v236_v28, %v235_v24  ;;  %v243_v32 = vrot.slane %v242_v29, 1  ;;  %v245_v33 = vmul.f32 0.25, %v219_v26 }
  0x49   : > { %v244_v34 = vadd.f32 %v243_v32, %v242_v29  ;;  %v246_v35 = vmul.f32 0.25, %v226_v30  ;;  %v247_v36 = vmul.f32 0.25, %v237_v31  ;;  %v249_v37 = vmul.f32 %v245_v33, %v245_v33 }
  0x4b   : > { %v248_v38 = vmul.f32 0.25, %v244_v34  ;;  %v250_v39 = vmul.f32 %v246_v35, %v246_v35  ;;  %v251_v40 = vsub.f32 %v247_v36, %v249_v37  ;;  %v261_v46 = vcombine.low %v245_v33, %v246_v35 }
  0x4d   : > { %v252_v41 = vsub.f32 %v248_v38, %v250_v39  ;;  %v253_v42 = vmax.f32 %v251_v40, 0.0  ;;  %v263_v48 = vsub.f32 %v208_v1, %v261_v46 }
  0x4f   : > { %v254_v43 = vmax.f32 %v252_v41, 0.0  ;;  %v255_v44 = vadd.f32 1e-05, %v253_v42 }
  0x51   : > { %v256_v45 = vadd.f32 1e-05, %v254_v43  ;;  %523 = vrsqrt.f32 %v255_v44 }
  0x53   : > { %525 = vrsqrt.f32 %v256_v45 }
  0x5b   : > { %v524_v47 = vpop.eup %523 }
  0x5d   : > { %v526_v49 = vpop.eup %525 }
  0x5e   : > { %v266_v50 = vcombine.low %v524_v47, %v526_v49 }
  0x60   : > { %v268_v51 = vmul.f32 %v266_v50, %v263_v48 }
  0x62   : > { %v270_v52 = vcombine.high %v268_v51, %v268_v51  ;;  %v272_v53 = vpack.c.bf16 %v268_v51, %v268_v51 }
  0x64   : > { %v273_v54 = vpack.c.bf16 %v270_v52, %v270_v52  ;;  %v287_v55 = vsel %vm285_vm1, %v272_v53, 0 }
  0x66   : > { %449 = vmatprep.subr.msk.bf16.mxu0 %vm285_vm1, %v273_v54 }
  0x67   : > { %293 = vmatpush1.bf16.msra.mxu0 %v287_v55 }
  0x6a   : > { %450 = vmatmul.mubr.msk.bf16.vlgmr.msra.gmra.mrb[0].mxu0 %vm281_vm2, %v274_v56 }
  0xba   : > { %v279_v57 = vpop.permute.xlu0 %278 }
 0x13d   : > { %v326_v58 = vpop.f32.mrb[0].mxu0 }
 0x13e   : > { %v327_v59 = vadd.f32 %v326_v58, %v279_v57  ;;  %v328_v60 = vpop.f32.mrb[1].mxu0 }
 0x13f   : > { %v329_v61 = vadd.f32 %v328_v60, %v279_v57  ;;  %v330_v62 = vpop.f32.mrb[2].mxu0 }
 0x140   : > { %v331_v63 = vpop.f32.mrb[3].mxu0 }
 0x141   : > { %v335_v0 = vcombine.low %v327_v59, %v329_v61 }
 0x143   : > { %337 = vst [vmem:[%s204_s19] sm:$0xff] %v335_v0 }
 0x144   : > { %570 = shalt.err (!%p567_p6)
}
 0x145   : > { %s571_s5 = scalar_lea.hbm %s797_s28, 128  ;;  %s575_s6 = scalar_lea.hbm %s849_s3, 256 }
 0x146   : > { %p572_p4 = scmp.ne.s32.totalorder %s797_s28, %s571_s5  ;;  %p576_p1 = scmp.lt.u32.totalorder %s797_s28, %s849_s3 }
 0x147   : > { %p577_p2 = scmp.lt.u32.totalorder %s575_s6, %s571_s5  ;;  %p579_p8 = scmp.lt.u32.totalorder %s571_s5, %s797_s28 }
 0x148   : > { %p573_p10 = pnand %p572_p4, %p858_p9 }
 0x149   : > { %p578_p5 = por %p577_p2, %p576_p1 }
 0x14a   : > { %p574_p12 = pneg %p573_p10 }
 0x14b   : > { %p580_p11 = por %p579_p8, %p578_p5 }
 0x14d   : > { %p581_p0 = pnand %p580_p11, %p574_p12 }
 0x14f   : > { %584 = shalt.err (!%p581_p0)
}
 0x150   : > { %460 = dma.vmem_to_hbm [thread:$0]  (%p858_p9), %s799_s21, 128, %s797_s28, %s339_s29  }
 0x151 PF: > { %s367_s10 = sand.u32 1, %s619_s12   ;;  %p859_p7 = scmp.ne.s32.totalorder %s854_s27, 0 }
 0x152   : > { %p860_p13 = scmp.ge.s32.totalorder %s639_s17, 2  ;;  %s368_s18 = scalar_lea.sflag [#allocation4], %s367_s10 }
 0x154   : > { %p467_p3 = pnand %p860_p13, %p859_p7 }
 0x156   : > { %614 = dma.done.wait (!%p467_p3), %s368_s18, 128  }
 0x157   : > { %616 = vsyncadd (!%p467_p3), %s368_s18, 4294967168  ;;  %s19_s17 = sadd.s32 1, %s639_s17   ;;  %s861_s12 = smov %s623_s13 }
 0x158   : > { %p16_p6 = scmp.ge.s32.totalorder %s19_s17, 4   ;;  %s862_s13 = smov %s627_s14 }
 0x159   : > { %s863_s14 = smov %s720_s26  ;;  %s864_s15 = smov %s635_s16 }
 0x15a   : > { %s865_s16 = smov %s867_s20  ;;  %18 = sbr.rel (!%p16_p6) target bundleno = 6 (0x6), region = 77 }
 0x161   :  { %373 = vsyncpa [#allocation3], 1 }
 0x162   :  { %375 = vsyncpa [#allocation3 + $0x1], 1 }
 0x163   :  { %376 = vsyncpa [#allocation4], 1 }
 0x164   :  { %378 = vsyncpa [#allocation4 + $0x1], 1 }

</bundles_post_ra>
